<compile_context>
chip_gen: v6e
topology: v6e:2x2x1
jax: 0.10.0
libtpu: 0.0.40
codegen_flags: <defaults>
</compile_context>

<pallas_src>
import functools

import jax
import jax.numpy as jnp
from jax.experimental import pallas as pl
from jax.experimental.pallas import tpu as pltpu


def _round_up(n, m):
    return ((n + m - 1) // m) * m


def _disc_kernel(x_ref, w1_ref, b1_ref, w2_ref, b2_ref, w3_ref, b3_ref, o_ref):
    # x_ref: (input_dim, batch_tile) bf16 -- batch already on the lane axis.
    xt = x_ref[...]
    # Layer 1: f32 MXU accumulation + f32 bias, bf16 tanh (EUP, 2x rate on v6e/v7x).
    h1 = jnp.tanh(
        (jnp.dot(w1_ref[...], xt, preferred_element_type=jnp.float32) + b1_ref[...])
        .astype(jnp.bfloat16)
    )                                                               # (hid_pad, bt) bf16
    # Layer 2.
    h2 = jnp.tanh(
        (jnp.dot(w2_ref[...], h1, preferred_element_type=jnp.float32) + b2_ref[...])
        .astype(jnp.bfloat16)
    )                                                               # (hid_pad, bt) bf16
    # Layer 3 + sigmoid.  Exact reciprocal: only (1, bt) elements, and approx
    # reciprocal could yield prob > 1 (NaN in log(1 - prob) losses).
    logit = (
        jnp.dot(w3_ref[...], h2, preferred_element_type=jnp.float32) + b3_ref[0]
    )                                                               # (1, bt) f32
    prob = pl.reciprocal(1.0 + jnp.exp(-logit), approx=False)
    o_ref[...] = prob.astype(o_ref.dtype)                           # lane-dense store


def _choose_tiling(batch, max_batch_tile):
    """Pick (batch_tile, padded_batch): pad only to a multiple of 128 and pick the
    largest tile <= max_batch_tile that divides it exactly, preferring grid >= 2
    (DMA pipelining + megacore sharding on v7x)."""
    b_pad = _round_up(max(batch, 1), 128)
    units = b_pad // 128
    tile_units = min(max(1, max_batch_tile // 128), units)
    while tile_units > 1 and (units % tile_units != 0 or units // tile_units < 2):
        tile_units -= 1
    return tile_units * 128, b_pad


def prepare_discriminator_params(w1, b1, w2, b2, w3, b3):
    """One-time weight prep (hoisted out of the per-call path).

    PyTorch layout: w* is (out, in), b* is (out,).  Hidden dim is zero-padded to a
    multiple of 128 (exact: padded units stay at tanh(0)=0 and padded weight
    rows/cols contribute nothing).  The input dim of w1 is left UNPADDED so x can
    stream with its true feature count."""
    hidden_dim, _ = w1.shape
    hid_pad = _round_up(hidden_dim, 128)
    hpad = hid_pad - hidden_dim
    f32, bf16 = jnp.float32, jnp.bfloat16

    w1p = jnp.pad(w1, ((0, hpad), (0, 0))).astype(bf16)          # (hid_pad, input_dim)
    w2p = jnp.pad(w2, ((0, hpad), (0, hpad))).astype(bf16)       # (hid_pad, hid_pad)
    w3p = jnp.pad(w3, ((0, 0), (0, hpad))).astype(bf16)          # (1, hid_pad)
    b1p = jnp.pad(b1.astype(f32), (0, hpad)).reshape(hid_pad, 1)
    b2p = jnp.pad(b2.astype(f32), (0, hpad)).reshape(hid_pad, 1)
    b3p = b3.astype(f32).reshape(1)
    return (w1p, b1p, w2p, b2p, w3p, b3p)


@functools.partial(jax.jit, static_argnames=("max_batch_tile",))
def discriminator_forward(x, params, *, max_batch_tile=512):
    """Forward pass.  `params` come from prepare_discriminator_params()."""
    w1p, b1p, w2p, b2p, w3p, b3p = params
    B, input_dim = x.shape
    hid_pad = w1p.shape[0]
    assert w1p.shape[1] == input_dim, "w1 input dim must match x feature dim"

    batch_tile, b_pad = _choose_tiling(B, max_batch_tile)
    grid = (b_pad // batch_tile,)
    f32, bf16 = jnp.float32, jnp.bfloat16

    # Pre-transpose + bf16 cast + zero batch-pad (fused by XLA): x streams as a
    # lane-dense (input_dim, batch) bf16 slab with no feature-dim padding.
    xp = jnp.pad(x.astype(bf16).T, ((0, 0), (0, b_pad - B)))

    def const(shape):
        return pl.BlockSpec(shape, lambda i: tuple(0 for _ in shape))

    out = pl.pallas_call(
        _disc_kernel,
        out_shape=jax.ShapeDtypeStruct((1, b_pad), f32),
        grid_spec=pltpu.PrefetchScalarGridSpec(
            num_scalar_prefetch=0,
            grid=grid,
            in_specs=[
                pl.BlockSpec((input_dim, batch_tile), lambda i: (0, i)),  # x (streams)
                const((hid_pad, input_dim)),                              # w1 (resident)
                const((hid_pad, 1)),                                      # b1
                const((hid_pad, hid_pad)),                                # w2
                const((hid_pad, 1)),                                      # b2
                const((1, hid_pad)),                                      # w3
                pl.BlockSpec(memory_space=pltpu.MemorySpace.SMEM),        # b3 scalar
            ],
            out_specs=pl.BlockSpec((1, batch_tile), lambda i: (0, i)),    # lane-dense
        ),
        compiler_params=pltpu.CompilerParams(
            dimension_semantics=("parallel",),   # batch tiles across v7x's 2 TCs
            vmem_limit_bytes=16 * 1024 * 1024,   # tight: real footprint ~1-2 MiB
        ),
    )(xp, w1p, b1p, w2p, b2p, w3p, b3p)

    return out[0, :B].reshape(B, 1).astype(x.dtype)


def init_discriminator_params(key, input_dim, hidden_dim, dtype=jnp.float32):
    """nn.Linear default init U(-1/sqrt(fan_in), 1/sqrt(fan_in)), PyTorch layout,
    plus the module's linear3.weight *= 0.1 and linear3.bias *= 0."""
    k1, k2, k3, k4, k5, k6 = jax.random.split(key, 6)

    def linear(kw, kb, fan_in, fan_out):
        bound = 1.0 / (fan_in ** 0.5)
        w = jax.random.uniform(kw, (fan_out, fan_in), dtype, -bound, bound)
        b = jax.random.uniform(kb, (fan_out,), dtype, -bound, bound)
        return w, b

    w1, b1 = linear(k1, k2, input_dim, hidden_dim)
    w2, b2 = linear(k3, k4, hidden_dim, hidden_dim)
    w3, b3 = linear(k5, k6, hidden_dim, 1)
    return w1, b1, w2, b2, w3 * 0.1, b3 * 0.0


def _reference_forward(x, w1, b1, w2, b2, w3, b3):
    h1 = jnp.tanh(x @ w1.T + b1)
    h2 = jnp.tanh(h1 @ w2.T + b2)
    return jax.nn.sigmoid(h2 @ w3.T + b3)


if __name__ == "__main__":
    key = jax.random.PRNGKey(0)
    kx, kp = jax.random.split(key)

    # Non-multiple-of-128 batch exercises the (128-granular) tail padding and the
    # tile-selection logic: B=300 -> b_pad=384, batch_tile=128, grid=(3,), so the
    # x DMA is genuinely pipelined against compute and the batch axis can shard
    # across both v7x TensorCores.
    batch, input_dim, hidden_dim = 300, 16, 32
    x = jax.random.normal(kx, (batch, input_dim), jnp.float32)
    raw_params = init_discriminator_params(kp, input_dim, hidden_dim)

    prepared = prepare_discriminator_params(*raw_params)   # one-time weight prep
    prob = discriminator_forward(x, prepared, max_batch_tile=512)
    prob = jax.block_until_ready(prob)

    ref = _reference_forward(x, *raw_params)
    assert prob.shape == (batch, 1)
    # bf16 MXU operands + bf16 tanh vs. full-f32 reference.
    assert jnp.allclose(prob, ref, atol=1e-2, rtol=1e-2), float(
        jnp.max(jnp.abs(prob - ref))
    )
    assert bool(jnp.all(prob <= 1.0) & jnp.all(prob >= 0.0))

    print("KERNEL_OK")
</pallas_src>

<mosaic_0001>
module attributes {stable_mosaic.version = 11 : i64} {
  func.func @_disc_kernel(%arg0: i32, %arg1: memref<16x128xbf16, #tpu.memory_space<vmem>>, %arg2: memref<128x16xbf16, #tpu.memory_space<vmem>>, %arg3: memref<128x1xf32, #tpu.memory_space<vmem>>, %arg4: memref<128x128xbf16, #tpu.memory_space<vmem>>, %arg5: memref<128x1xf32, #tpu.memory_space<vmem>>, %arg6: memref<1x128xbf16, #tpu.memory_space<vmem>>, %arg7: memref<1xf32, #tpu.memory_space<smem>>, %arg8: memref<1x128xf32, #tpu.memory_space<vmem>>) attributes {dimension_semantics = [#tpu.dimension_semantics<parallel>], iteration_bounds = array<i64: 3>, scalar_prefetch = 0 : i64, scratch_operands = 0 : i64, tpu.core_type = #tpu.core_type<tc>, window_params = [{transform_indices = @transform_0, window_bounds = array<i64: 16, 128>}, {pipeline_mode = #tpu.pipeline_mode<synchronous>, transform_indices = @transform_1, window_bounds = array<i64: 128, 16>}, {pipeline_mode = #tpu.pipeline_mode<synchronous>, transform_indices = @transform_2, window_bounds = array<i64: 128, 1>}, {pipeline_mode = #tpu.pipeline_mode<synchronous>, transform_indices = @transform_3, window_bounds = array<i64: 128, 128>}, {pipeline_mode = #tpu.pipeline_mode<synchronous>, transform_indices = @transform_4, window_bounds = array<i64: 128, 1>}, {pipeline_mode = #tpu.pipeline_mode<synchronous>, transform_indices = @transform_5, window_bounds = array<i64: 1, 128>}, {transform_indices = @transform_6, window_bounds = array<i64: 1>}, {transform_indices = @transform_7, window_bounds = array<i64: 1, 128>}]} {
    %c0 = arith.constant 0 : index
    %c0_0 = arith.constant 0 : index
    %0 = vector.load %arg1[%c0, %c0_0] : memref<16x128xbf16, #tpu.memory_space<vmem>>, vector<16x128xbf16>
    %c0_1 = arith.constant 0 : index
    %c0_2 = arith.constant 0 : index
    %1 = vector.load %arg2[%c0_1, %c0_2] : memref<128x16xbf16, #tpu.memory_space<vmem>>, vector<128x16xbf16>
    %cst = arith.constant dense<0.000000e+00> : vector<128x128xf32>
    %2 = tpu.matmul %1, %0, %cst {dimension_numbers = #tpu.dot_dimension_numbers<[1], [0], [0], [1], [0, 0, 1, 1], [], []>} : vector<128x16xbf16>, vector<16x128xbf16>, vector<128x128xf32> -> vector<128x128xf32>
    %c0_3 = arith.constant 0 : index
    %c0_4 = arith.constant 0 : index
    %3 = vector.load %arg3[%c0_3, %c0_4] : memref<128x1xf32, #tpu.memory_space<vmem>>, vector<128x1xf32>
    %4 = vector.broadcast %3 : vector<128x1xf32> to vector<128x128xf32>
    %5 = arith.addf %2, %4 : vector<128x128xf32>
    %6 = arith.truncf %5 : vector<128x128xf32> to vector<128x128xbf16>
    %7 = math.tanh %6 : vector<128x128xbf16>
    %c0_5 = arith.constant 0 : index
    %c0_6 = arith.constant 0 : index
    %8 = vector.load %arg4[%c0_5, %c0_6] : memref<128x128xbf16, #tpu.memory_space<vmem>>, vector<128x128xbf16>
    %cst_7 = arith.constant dense<0.000000e+00> : vector<128x128xf32>
    %9 = tpu.matmul %8, %7, %cst_7 {dimension_numbers = #tpu.dot_dimension_numbers<[1], [0], [0], [1], [0, 0, 1, 1], [], []>} : vector<128x128xbf16>, vector<128x128xbf16>, vector<128x128xf32> -> vector<128x128xf32>
    %c0_8 = arith.constant 0 : index
    %c0_9 = arith.constant 0 : index
    %10 = vector.load %arg5[%c0_8, %c0_9] : memref<128x1xf32, #tpu.memory_space<vmem>>, vector<128x1xf32>
    %11 = vector.broadcast %10 : vector<128x1xf32> to vector<128x128xf32>
    %12 = arith.addf %9, %11 : vector<128x128xf32>
    %13 = arith.truncf %12 : vector<128x128xf32> to vector<128x128xbf16>
    %14 = math.tanh %13 : vector<128x128xbf16>
    %c0_10 = arith.constant 0 : index
    %c0_11 = arith.constant 0 : index
    %15 = vector.load %arg6[%c0_10, %c0_11] : memref<1x128xbf16, #tpu.memory_space<vmem>>, vector<1x128xbf16>
    %cst_12 = arith.constant dense<0.000000e+00> : vector<1x128xf32>
    %16 = tpu.matmul %15, %14, %cst_12 {dimension_numbers = #tpu.dot_dimension_numbers<[1], [0], [0], [1], [0, 0, 1, 1], [], []>} : vector<1x128xbf16>, vector<128x128xbf16>, vector<1x128xf32> -> vector<1x128xf32>
    %c0_13 = arith.constant 0 : index
    %17 = memref.load %arg7[%c0_13] : memref<1xf32, #tpu.memory_space<smem>>
    %18 = vector.broadcast %17 : f32 to vector<1x128xf32>
    %19 = arith.addf %16, %18 : vector<1x128xf32>
    %cst_14 = arith.constant 0.000000e+00 : f32
    %20 = vector.broadcast %cst_14 : f32 to vector<1x128xf32>
    %21 = arith.subf %20, %19 : vector<1x128xf32>
    %22 = math.exp %21 : vector<1x128xf32>
    %cst_15 = arith.constant 1.000000e+00 : f32
    %23 = vector.broadcast %cst_15 : f32 to vector<1x128xf32>
    %24 = arith.addf %23, %22 : vector<1x128xf32>
    %25 = tpu.reciprocal %24 : vector<1x128xf32> -> vector<1x128xf32>
    %c0_16 = arith.constant 0 : index
    %c0_17 = arith.constant 0 : index
    %26 = vector.load %arg8[%c0_16, %c0_17] : memref<1x128xf32, #tpu.memory_space<vmem>>, vector<1x128xf32>
    tpu.vector_store %arg8[%c0_16, %c0_17], %25 {strides = array<i32>} : memref<1x128xf32, #tpu.memory_space<vmem>>, vector<1x128xf32>,
    return
  }
  func.func @transform_0(%arg0: i32) -> (i32, i32) {
    %c0_i32 = arith.constant 0 : i32
    %c0_i32_0 = arith.constant 0 : i32
    return %c0_i32, %arg0 : i32, i32
  }
  func.func @transform_1(%arg0: i32) -> (i32, i32) {
    %c0_i32 = arith.constant 0 : i32
    %c0_i32_0 = arith.constant 0 : i32
    %c0_i32_1 = arith.constant 0 : i32
    return %c0_i32, %c0_i32_0 : i32, i32
  }
  func.func @transform_2(%arg0: i32) -> (i32, i32) {
    %c0_i32 = arith.constant 0 : i32
    %c0_i32_0 = arith.constant 0 : i32
    %c0_i32_1 = arith.constant 0 : i32
    return %c0_i32, %c0_i32_0 : i32, i32
  }
  func.func @transform_3(%arg0: i32) -> (i32, i32) {
    %c0_i32 = arith.constant 0 : i32
    %c0_i32_0 = arith.constant 0 : i32
    %c0_i32_1 = arith.constant 0 : i32
    return %c0_i32, %c0_i32_0 : i32, i32
  }
  func.func @transform_4(%arg0: i32) -> (i32, i32) {
    %c0_i32 = arith.constant 0 : i32
    %c0_i32_0 = arith.constant 0 : i32
    %c0_i32_1 = arith.constant 0 : i32
    return %c0_i32, %c0_i32_0 : i32, i32
  }
  func.func @transform_5(%arg0: i32) -> (i32, i32) {
    %c0_i32 = arith.constant 0 : i32
    %c0_i32_0 = arith.constant 0 : i32
    %c0_i32_1 = arith.constant 0 : i32
    return %c0_i32, %c0_i32_0 : i32, i32
  }
  func.func @transform_6(%arg0: i32) -> i32 {
    %c0_i32 = arith.constant 0 : i32
    %c0_i32_0 = arith.constant 0 : i32
    return %c0_i32 : i32
  }
  func.func @transform_7(%arg0: i32) -> (i32, i32) {
    %c0_i32 = arith.constant 0 : i32
    %c0_i32_0 = arith.constant 0 : i32
    return %c0_i32, %arg0 : i32, i32
  }
}

</mosaic_0001>

<bundles_post_ra>
// kernel: discriminator_forward.1
= control target key start
LH: loop header
LB: loop body
LE: loop exit
PB: predicated region body
PF: predicated region fallthrough
CT: control target
= control target key end

     0   :  { %s1512_s0 = inlined_call_operand.vmem [shape: bf16[16,384], index: 0, kind: input, shape index: {}]   ;;  %s1513_s1 = inlined_call_operand.vmem [shape: bf16[128,16], index: 1, kind: input, shape index: {}]   ;;  %s1514_s2 = inlined_call_operand.vmem [shape: f32[128,1], index: 2, kind: input, shape index: {}]   ;;  %s1515_s3 = inlined_call_operand.vmem [shape: bf16[128,128], index: 3, kind: input, shape index: {}]   ;;  %s1516_s4 = inlined_call_operand.vmem [shape: f32[128,1], index: 4, kind: input, shape index: {}]   ;;  %s1517_s5 = inlined_call_operand.vmem [shape: bf16[1,128], index: 5, kind: input, shape index: {}]   ;;  %s1518_s6 = inlined_call_operand.<no memory space> [shape: f32[1], index: 6, kind: input, shape index: {}]   ;;  %s1519_s7 = inlined_call_operand.vmem [shape: f32[1,384], index: 7, kind: output, shape index: {}]  }
   0x1   :  { %12 = sst [smem:[#allocation2]] %s1518_s6 }
   0x2   :  { %s1288_s26 = smov 0   ;;  %s1290_s27 = smov 0  }
   0x3   :  { %s1292_s28 = smov 0  }
   0x4 LB: > { %s997_s6 = sadd.s32 4294967295, %s1240_s28   ;;  %s1305_s29 = sadd.s32 1, %s1240_s28   ;;  %s1240_s28 = sphi %s1292_s28, %s1522_s28   ;;  %s1236_s27 = sphi %s1290_s27, %s1521_s27   ;;  %s1232_s26 = sphi %s1288_s26, %s1520_s26  }
   0x5   : > { %s22_s30 = ssub.s32 %s1240_s28, %s1305_s29  ;;  %s25_s8 = sadd.s32 1, %s1236_s27 }
   0x6   : > { %p23_p0 = scmp.eq.s32.totalorder %s22_s30, 0  ;;  %p32_p1 = scmp.ne.s32.totalorder %s1236_s27, %s1232_s26 }
   0x7   : > { %p33_p2 = scmp.eq.s32.totalorder %s1240_s28, 0  ;;  %p1000_p4 = scmp.ge.s32.totalorder %s1240_s28, 3 }
   0x8   : > { %s1314_s9 = scalar_select %p23_p0, %s1236_s27, %s25_s8  }
   0x9   : > { %p34_p3 = por %p33_p2, %p32_p1  ;;  %228 = sbr.rel (%p1000_p4) target bundleno = 19 (0x13), region = 40 }
   0xe   : > { %231 = sbr.rel (!%p34_p3) target bundleno = 19 (0x13), region = 44  ;;  %s233_s10 = sand.u32 (%p34_p3), 1, %s1236_s27  }
   0xf   : > { %s1002_s11 = sshll.u32 (%p34_p3), %s1240_s28, 2  ;;  %s1001_s12 = sshll.u32 (%p34_p3), %s233_s10, 3 }
  0x10   : > { %s237_s15 = scalar_lea.vmem (%p34_p3), %s1512_s0, %s1002_s11  ;;  %s235_s16 = scalar_lea.vmem (%p34_p3), [#allocation3], %s1001_s12 }
  0x11   : > { %v254_v0 = vld [vmem:[%s237_s15] sm:$0xf] (%p34_p3)  ;;  %v256_v1 = vld [vmem:[%s237_s15 + $0xc] sm:$0xf] (%p34_p3) }
  0x12   : > { %255 = vst [vmem:[%s235_s16] sm:$0xf] (%p34_p3), %v254_v0  ;;  %257 = vst [vmem:[%s235_s16 + $0x4] sm:$0xf] (%p34_p3), %v256_v1 }
  0x13 PF: > { %p1003_p5 = scmp.ge.s32.totalorder %s1240_s28, 1  ;;  %p284_p6 = scmp.lt.s32.totalorder %s1240_s28, 4 }
  0x15   : > { %p285_p7 = pnand %p1003_p5, %p284_p6 }
  0x16   : > { %s291_s17 = sand.u32 (!%p285_p7), 1, %s1232_s26   ;;  %s896_s23 = sld [smem:[#allocation2]] (!%p285_p7) }
  0x17   : > { %288 = sbr.rel (%p285_p7) target bundleno = 807 (0x327), region = 85  ;;  %s1004_s20 = sshll.u32 (!%p285_p7), %s291_s17, 3 }
  0x18   : > { %s293_s21 = scalar_lea.vmem (!%p285_p7), [#allocation3], %s1004_s20  ;;  %p320_p8 = scmp.lt.s32.totalorder (!%p285_p7), %s997_s6, 2 }
  0x1c   : > { %v1166_v2 = vld [vmem:[%s1513_s1] sm:$0xff]   ;;  %vm484_vm0 = vcmask 130048   ;;  %v1242_v4 = vmov 0   ;;  %v1167_v5 = vld [vmem:[%s1513_s1 + $0x8] sm:$0xff]   ;;  %v1168_v6 = vld [vmem:[%s1513_s1 + $0x10] sm:$0xff]   ;;  %vm1244_vm1 = vmmov 0  }
  0x1d   : > { %1068 = vmatprep.mubr.msk.bf16.mxu0 %vm484_vm0, %v1166_v2  ;;  %v1165_v3 = vld [vmem:[%s293_s21] sm:$0xff]   ;;  %1163 = vset.pattern.permute.xlu0 %v1242_v4  ;;  %v356_v7 = vld [vmem:[%s1514_s2 + $0x70] sm:$0xff]  ;;  %v357_v9 = vld [vmem:[%s1514_s2 + $0x78] sm:$0xff]  ;;  %s1524_s6 = smov (!%p320_p8, %s997_s6), 2 }
  0x1e   : > { %1164 = vset.pattern.permute.xlu1 %v1242_v4  ;;  %1066 = vmatprep.subr.bf16.mxu0 %v1165_v3  ;;  %v354_v8 = vld [vmem:[%s1514_s2 + $0x60] sm:$0xff]  ;;  %v355_v10 = vld [vmem:[%s1514_s2 + $0x68] sm:$0xff]  ;;  %v1169_v11 = vld [vmem:[%s1513_s1 + $0x18] sm:$0xff]   ;;  %s322_s26 = scalar_lea.vmem %s1519_s7, %s1524_s6 }
  0x1f   : > { %1067 = vmatpush3.bf16.msra.mxu0 %v1165_v3  ;;  %430 = vperm.xlu0 %1163, %v356_v7   ;;  %v1170_v12 = vld [vmem:[%s1513_s1 + $0x20] sm:$0xff]   ;;  %v352_v13 = vld [vmem:[%s1514_s2 + $0x50] sm:$0xff]  ;;  %v353_v14 = vld [vmem:[%s1514_s2 + $0x58] sm:$0xff] }
  0x20   : > { %420 = vperm.xlu1 %1164, %v354_v8   ;;  %v1171_v15 = vld [vmem:[%s1513_s1 + $0x28] sm:$0xff]   ;;  %v350_v16 = vld [vmem:[%s1514_s2 + $0x40] sm:$0xff]  ;;  %v1172_v18 = vld [vmem:[%s1513_s1 + $0x30] sm:$0xff]  }
  0x21   : > { %v351_v17 = vld [vmem:[%s1514_s2 + $0x48] sm:$0xff]  ;;  %v348_v19 = vld [vmem:[%s1514_s2 + $0x30] sm:$0xff]  ;;  %v349_v20 = vld [vmem:[%s1514_s2 + $0x38] sm:$0xff] }
  0x22   : > { %1069 = vmatmul.mubr.msk.bf16.vlgmr.msra.gmra.mxu0 %vm484_vm0, %v1167_v5  ;;  %v346_v21 = vld [vmem:[%s1514_s2 + $0x20] sm:$0xff]  ;;  %v347_v22 = vld [vmem:[%s1514_s2 + $0x28] sm:$0xff]  ;;  %v1173_v23 = vld [vmem:[%s1513_s1 + $0x38] sm:$0xff]  }
  0x23   : > { %1072 = vmatprep.mubr.msk.bf16.mxu0 %vm484_vm0, %v1168_v6  ;;  %435 = vperm.xlu0 %1163, %v357_v9   ;;  %v344_v24 = vld [vmem:[%s1514_s2 + $0x10] sm:$0xff]  ;;  %v345_v25 = vld [vmem:[%s1514_s2 + $0x18] sm:$0xff]  ;;  %v342_v26 = vld [vmem:[%s1514_s2] sm:$0xff] }
  0x24   : > { %425 = vperm.xlu1 %1164, %v355_v10   ;;  %v343_v27 = vld [vmem:[%s1514_s2 + $0x8] sm:$0xff]  ;;  %v652_v28 = vld [vmem:[%s1516_s4 + $0x70] sm:$0xff]  ;;  %v653_v29 = vld [vmem:[%s1516_s4 + $0x78] sm:$0xff] }
  0x25   : > { %v650_v30 = vld [vmem:[%s1516_s4 + $0x60] sm:$0xff]  ;;  %v651_v31 = vld [vmem:[%s1516_s4 + $0x68] sm:$0xff]  ;;  %v648_v32 = vld [vmem:[%s1516_s4 + $0x50] sm:$0xff] }
  0x26   : > { %v649_v33 = vld [vmem:[%s1516_s4 + $0x58] sm:$0xff]  ;;  %v646_v34 = vld [vmem:[%s1516_s4 + $0x40] sm:$0xff]  ;;  %v647_v35 = vld [vmem:[%s1516_s4 + $0x48] sm:$0xff] }
  0x27   : > { %410 = vperm.xlu0 %1163, %v352_v13   ;;  %v644_v36 = vld [vmem:[%s1516_s4 + $0x30] sm:$0xff]  ;;  %v645_v37 = vld [vmem:[%s1516_s4 + $0x38] sm:$0xff]  ;;  %v642_v38 = vld [vmem:[%s1516_s4 + $0x20] sm:$0xff] }
  0x28   : > { %415 = vperm.xlu1 %1164, %v353_v14   ;;  %v643_v39 = vld [vmem:[%s1516_s4 + $0x28] sm:$0xff]  ;;  %v640_v40 = vld [vmem:[%s1516_s4 + $0x10] sm:$0xff]  ;;  %v641_v41 = vld [vmem:[%s1516_s4 + $0x18] sm:$0xff] }
  0x29   : > { %v638_v42 = vld [vmem:[%s1516_s4] sm:$0xff]  ;;  %v639_v43 = vld [vmem:[%s1516_s4 + $0x8] sm:$0xff] }
  0x2a   : > { %1073 = vmatmul.mubr.msk.bf16.gmra.mxu0 %vm484_vm0, %v1169_v11  ;;  %v1174_v44 = vld [vmem:[%s1515_s3] sm:$0xff]  }
  0x2b   : > { %1076 = vmatprep.mubr.msk.bf16.mxu0 %vm484_vm0, %v1170_v12  ;;  %400 = vperm.xlu0 %1163, %v350_v16  }
  0x2c   : > { %405 = vperm.xlu1 %1164, %v351_v17   ;;  %1100 = vmatprep.mubr.bf16.mxu1 %v1174_v44 }
  0x2f   : > { %390 = vperm.xlu0 %1163, %v348_v19  }
  0x30   : > { %395 = vperm.xlu1 %1164, %v349_v20  }
  0x32   : > { %1077 = vmatmul.mubr.msk.bf16.gmra.mxu0 %vm484_vm0, %v1171_v15 }
  0x33   : > { %1080 = vmatprep.mubr.msk.bf16.mxu0 %vm484_vm0, %v1172_v18  ;;  %380 = vperm.xlu0 %1163, %v346_v21  }
  0x34   : > { %385 = vperm.xlu1 %1164, %v347_v22  }
  0x37   : > { %370 = vperm.xlu0 %1163, %v344_v24  }
  0x38   : > { %375 = vperm.xlu1 %1164, %v345_v25  }
  0x3a   : > { %1081 = vmatmul.mubr.msk.bf16.gmra.mxu0 %vm484_vm0, %v1173_v23 }
  0x3b   : > { %360 = vperm.xlu0 %1163, %v342_v26  }
  0x3c   : > { %365 = vperm.xlu1 %1164, %v343_v27  }
  0x3f   : > { %726 = vperm.xlu0 %1163, %v652_v28  }
  0x40   : > { %731 = vperm.xlu1 %1164, %v653_v29  }
  0x43   : > { %716 = vperm.xlu0 %1163, %v650_v30  }
  0x44   : > { %721 = vperm.xlu1 %1164, %v651_v31  }
  0x47   : > { %706 = vperm.xlu0 %1163, %v648_v32  }
  0x48   : > { %711 = vperm.xlu1 %1164, %v649_v33  }
  0x4b   : > { %696 = vperm.xlu0 %1163, %v646_v34  }
  0x4c   : > { %701 = vperm.xlu1 %1164, %v647_v35  }
  0x4f   : > { %686 = vperm.xlu0 %1163, %v644_v36  }
  0x50   : > { %691 = vperm.xlu1 %1164, %v645_v37  }
  0x53   : > { %676 = vperm.xlu0 %1163, %v642_v38  }
  0x54   : > { %681 = vperm.xlu1 %1164, %v643_v39  }
  0x57   : > { %666 = vperm.xlu0 %1163, %v640_v40  }
  0x58   : > { %671 = vperm.xlu1 %1164, %v641_v41  }
  0x5b   : > { %656 = vperm.xlu0 %1163, %v638_v42  }
  0x5c   : > { %661 = vperm.xlu1 %1164, %v639_v43  }
  0x9a   : > { %v431_v51 = vpop.permute.xlu0 %430 }
  0x9b   : > { %v421_v49 = vpop.permute.xlu1 %420 }
  0x9e   : > { %v436_v56 = vpop.permute.xlu0 %435 }
  0x9f   : > { %v426_v54 = vpop.permute.xlu1 %425 }
  0xa2   : > { %v411_v61 = vpop.permute.xlu0 %410 }
  0xa3   : > { %v416_v59 = vpop.permute.xlu1 %415 }
  0xa6   : > { %v401_v2 = vpop.permute.xlu0 %400 }
  0xa7   : > { %v406_v0 = vpop.permute.xlu1 %405 }
  0xaa   : > { %v391_v14 = vpop.permute.xlu0 %390 }
  0xab   : > { %v396_v11 = vpop.permute.xlu1 %395 }
  0xae   : > { %v381_v21 = vpop.permute.xlu0 %380 }
  0xaf   : > { %v386_v18 = vpop.permute.xlu1 %385 }
  0xb2   : > { %v371_v27 = vpop.permute.xlu0 %370 }
  0xb3   : > { %v376_v25 = vpop.permute.xlu1 %375 }
  0xb6   : > { %v361_v36 = vpop.permute.xlu0 %360 }
  0xb7   : > { %v366_v33 = vpop.permute.xlu1 %365 }
  0xe2   : > { %v1070_v45 = vpop.f32.mrf.mxu0 }
  0xe3   : > { %v552_v32 = vadd.f32 %v1070_v45, %v371_v27  ;;  %v1175_v45 = vld [vmem:[%s1515_s3 + $0x8] sm:$0xff]  }
  0xe4   : > { %v1456_v46 = vpop.f32.mrf.mxu0 }
  0xe5   : > { %v544_v38 = vadd.f32 %v1456_v46, %v361_v36  ;;  %v1176_v46 = vld [vmem:[%s1515_s3 + $0x10] sm:$0xff]  }
  0xe6   : > { %v1071_v47 = vpop.f32.mrf.mxu0 }
  0xe7   : > { %v555_v29 = vadd.f32 %v1071_v47, %v376_v25  ;;  %v1177_v47 = vld [vmem:[%s1515_s3 + $0x18] sm:$0xff]  }
  0xe8   : > { %v546_v48 = vpop.f32.mrf.mxu0 }
  0xe9   : > { %v607_v34 = vpack.c.bf16 %v555_v29, %v552_v32  ;;  %v547_v35 = vadd.f32 %v546_v48, %v366_v33  ;;  %v1178_v48 = vld [vmem:[%s1515_s3 + $0x20] sm:$0xff]  }
  0xea   : > { %v1074_v50 = vpop.f32.mrf.mxu0 }
  0xeb   : > { %v568_v22 = vadd.f32 %v1074_v50, %v391_v14  ;;  %v606_v39 = vpack.c.bf16 %v547_v35, %v544_v38  ;;  %v1180_v50 = vld [vmem:[%s1515_s3 + $0x30] sm:$0xff]  }
  0xec   : > { %v559_v52 = vpop.f32.mrf.mxu0 }
  0xed   : > { %v560_v26 = vadd.f32 %v559_v52, %v381_v21  ;;  %v1243_v52 = vmov 0.0  }
  0xee   : > { %v1075_v53 = vpop.f32.mrf.mxu0  ;;  %1116 = vmatprep.subr.bf16.mxu0 %v1243_v52  ;;  %1132 = vmatprep.mubr.msk.bf16.mxu0 %vm1244_vm1, %v1243_v52 }
  0xef   : > { %v571_v19 = vadd.f32 %v1075_v53, %v396_v11 }
  0xf0   : > { %v562_v55 = vpop.f32.mrf.mxu0 }
  0xf1   : > { %v609_v23 = vpack.c.bf16 %v571_v19, %v568_v22  ;;  %v563_v24 = vadd.f32 %v562_v55, %v386_v18 }
  0xf2   : > { %v1078_v57 = vpop.f32.mrf.mxu0 }
  0xf3   : > { %v584_v12 = vadd.f32 %v1078_v57, %v411_v61  ;;  %v608_v30 = vpack.c.bf16 %v563_v24, %v560_v26 }
  0xf4   : > { %v575_v58 = vpop.f32.mrf.mxu0 }
  0xf5   : > { %v576_v17 = vadd.f32 %v575_v58, %v401_v2  ;;  %v732_v58 = vpop.permute.xlu1 %731 }
  0xf6   : > { %v1079_v60 = vpop.f32.mrf.mxu0 }
  0xf7   : > { %v587_v7 = vadd.f32 %v1079_v60, %v416_v59  ;;  %v727_v60 = vpop.permute.xlu0 %726 }
  0xf8   : > { %v578_v62 = vpop.f32.mrf.mxu0 }
  0xf9   : > { %v611_v15 = vpack.c.bf16 %v587_v7, %v584_v12  ;;  %v579_v16 = vadd.f32 %v578_v62, %v406_v0 }
  0xfa   : > { %v1082_v63 = vpop.f32.mrf.mxu0 }
  0xfb   : > { %v600_v4 = vadd.f32 %v1082_v63, %v431_v51  ;;  %v610_v20 = vpack.c.bf16 %v579_v16, %v576_v17  ;;  %v1181_v51 = vld [vmem:[%s1515_s3 + $0x38] sm:$0xff]   ;;  %v722_v63 = vpop.permute.xlu1 %721 }
  0xfc   : > { %v591_v1 = vpop.f32.mrf.mxu0 }
  0xfd   : > { %v592_v8 = vadd.f32 %v591_v1, %v421_v49  ;;  %v1179_v49 = vld [vmem:[%s1515_s3 + $0x28] sm:$0xff]   ;;  %v717_v1 = vpop.permute.xlu0 %716 }
  0xfe   : > { %v1083_v3 = vpop.f32.mrf.mxu0 }
  0xff   : > { %v603_v5 = vadd.f32 %v1083_v3, %v436_v56 }
 0x100   : > { %v594_v6 = vpop.f32.mrf.mxu0 }
 0x101   : > { %v613_v9 = vpack.c.bf16 %v603_v5, %v600_v4  ;;  %v595_v10 = vadd.f32 %v594_v6, %v426_v54  ;;  %v712_v4 = vpop.permute.xlu1 %711  ;;  %v707_v6 = vpop.permute.xlu0 %706 }
 0x103   : > { %1182 = vtanh.bf16 %v613_v9  ;;  %v612_v13 = vpack.c.bf16 %v595_v10, %v592_v8 }
 0x105   : > { %1184 = vtanh.bf16 %v612_v13  ;;  %v702_v9 = vpop.permute.xlu1 %701  ;;  %v697_v13 = vpop.permute.xlu0 %696 }
 0x106   : > { %1186 = vtanh.bf16 %v611_v15 }
 0x107   : > { %1188 = vtanh.bf16 %v610_v20 }
 0x108   : > { %1190 = vtanh.bf16 %v609_v23 }
 0x109   : > { %1192 = vtanh.bf16 %v608_v30  ;;  %v692_v20 = vpop.permute.xlu1 %691  ;;  %v687_v22 = vpop.permute.xlu0 %686 }
 0x10a   : > { %1194 = vtanh.bf16 %v607_v34 }
 0x10b   : > { %1196 = vtanh.bf16 %v606_v39 }
 0x10d   : > { %v682_v26 = vpop.permute.xlu1 %681  ;;  %v677_v29 = vpop.permute.xlu0 %676 }
 0x111   : > { %v1183_v28 = vpop.eup %1182  ;;  %v672_v33 = vpop.permute.xlu1 %671 }
 0x112   : > { %1084 = vmatprep.subr.bf16.mxu1 %v1183_v28  ;;  %v667_v36 = vpop.permute.xlu0 %666 }
 0x113   : > { %v1185_v31 = vpop.eup %1184  ;;  %1085 = vmatpush3.bf16.msra.mxu1 %v1183_v28 }
 0x114   : > { %1086 = vmatprep.subr.bf16.mxu1 %v1185_v31  ;;  %v1187_v37 = vpop.eup %1186 }
 0x115   : > { %v1189_v40 = vpop.eup %1188 }
 0x116   : > { %v1191_v41 = vpop.eup %1190 }
 0x117   : > { %1087 = vmatpush3.bf16.msra.mxu1 %v1185_v31  ;;  %v1193_v42 = vpop.eup %1192 }
 0x118   : > { %1088 = vmatprep.subr.bf16.mxu1 %v1187_v37  ;;  %v1195_v43 = vpop.eup %1194 }
 0x119   : > { %v1197_v44 = vpop.eup %1196 }
 0x11b   : > { %1089 = vmatpush3.bf16.msra.mxu1 %v1187_v37 }
 0x11c   : > { %1090 = vmatprep.subr.bf16.mxu1 %v1189_v40 }
 0x11f   : > { %1091 = vmatpush3.bf16.msra.mxu1 %v1189_v40 }
 0x120   : > { %1092 = vmatprep.subr.bf16.mxu1 %v1191_v41 }
 0x123   : > { %1093 = vmatpush3.bf16.msra.mxu1 %v1191_v41  ;;  %v662_v41 = vpop.permute.xlu1 %661 }
 0x124   : > { %1094 = vmatprep.subr.bf16.mxu1 %v1193_v42 }
 0x127   : > { %1095 = vmatpush3.bf16.msra.mxu1 %v1193_v42 }
 0x128   : > { %1096 = vmatprep.subr.bf16.mxu1 %v1195_v43 }
 0x12b   : > { %1097 = vmatpush3.bf16.msra.mxu1 %v1195_v43 }
 0x12c   : > { %1098 = vmatprep.subr.bf16.mxu1 %v1197_v44 }
 0x12f   : > { %1099 = vmatpush3.bf16.msra.mxu1 %v1197_v44  ;;  %v657_v44 = vpop.permute.xlu0 %656 }
 0x132   : > { %1101 = vmatmul.mubr.bf16.vlgmr.msra.gmra.mxu1 %v1175_v45 }
 0x133   : > { %1104 = vmatprep.mubr.bf16.mxu1 %v1176_v46 }
 0x13a   : > { %1105 = vmatmul.mubr.bf16.gmra.mxu1 %v1177_v47 }
 0x13b   : > { %1108 = vmatprep.mubr.bf16.mxu1 %v1178_v48 }
 0x142   : > { %1109 = vmatmul.mubr.bf16.gmra.mxu1 %v1179_v49 }
 0x143   : > { %1112 = vmatprep.mubr.bf16.mxu1 %v1180_v50 }
 0x14a   : > { %1113 = vmatmul.mubr.bf16.gmra.mxu1 %v1181_v51 }
 0x1f2   : > { %v1102_v53 = vpop.f32.mrf.mxu1 }
 0x1f3   : > { %v825_v40 = vadd.f32 %v1102_v53, %v667_v36 }
 0x1f4   : > { %v1482_v54 = vpop.f32.mrf.mxu1 }
 0x1f5   : > { %v817_v46 = vadd.f32 %v1482_v54, %v657_v44  ;;  %v895_v54 = vld [vmem:[%s1517_s5] sm:$0x1] }
 0x1f6   : > { %v1103_v55 = vpop.f32.mrf.mxu1 }
 0x1f7   : > { %v828_v37 = vadd.f32 %v1103_v55, %v672_v33  ;;  %v897_v55 = vstv %s896_s23 }
 0x1f8   : > { %v819_v56 = vpop.f32.mrf.mxu1 }
 0x1f9   : > { %v880_v42 = vpack.c.bf16 %v828_v37, %v825_v40  ;;  %v820_v43 = vadd.f32 %v819_v56, %v662_v41 }
 0x1fa   : > { %v1106_v57 = vpop.f32.mrf.mxu1 }
 0x1fb   : > { %v841_v30 = vadd.f32 %v1106_v57, %v687_v22  ;;  %v879_v47 = vpack.c.bf16 %v820_v43, %v817_v46 }
 0x1fc   : > { %v832_v59 = vpop.f32.mrf.mxu1 }
 0x1fd   : > { %v833_v35 = vadd.f32 %v832_v59, %v677_v29 }
 0x1fe   : > { %v1107_v61 = vpop.f32.mrf.mxu1 }
 0x1ff   : > { %v844_v27 = vadd.f32 %v1107_v61, %v692_v20 }
 0x200   : > { %v835_v62 = vpop.f32.mrf.mxu1 }
 0x201   : > { %v882_v31 = vpack.c.bf16 %v844_v27, %v841_v30  ;;  %v836_v32 = vadd.f32 %v835_v62, %v682_v26 }
 0x202   : > { %v1110_v0 = vpop.f32.mrf.mxu1 }
 0x203   : > { %v857_v21 = vadd.f32 %v1110_v0, %v707_v6  ;;  %v881_v38 = vpack.c.bf16 %v836_v32, %v833_v35 }
 0x204   : > { %v848_v2 = vpop.f32.mrf.mxu1 }
 0x205   : > { %v849_v25 = vadd.f32 %v848_v2, %v697_v13 }
 0x206   : > { %v1111_v3 = vpop.f32.mrf.mxu1 }
 0x207   : > { %v860_v18 = vadd.f32 %v1111_v3, %v712_v4 }
 0x208   : > { %v851_v5 = vpop.f32.mrf.mxu1 }
 0x209   : > { %v884_v23 = vpack.c.bf16 %v860_v18, %v857_v21  ;;  %v852_v24 = vadd.f32 %v851_v5, %v702_v9 }
 0x20a   : > { %v1114_v7 = vpop.f32.mrf.mxu1 }
 0x20b   : > { %v873_v11 = vadd.f32 %v1114_v7, %v727_v60  ;;  %v883_v28 = vpack.c.bf16 %v852_v24, %v849_v25 }
 0x20c   : > { %v864_v8 = vpop.f32.mrf.mxu1 }
 0x20d   : > { %v865_v15 = vadd.f32 %v864_v8, %v717_v1 }
 0x20e   : > { %v1115_v10 = vpop.f32.mrf.mxu1 }
 0x20f   : > { %v876_v12 = vadd.f32 %v1115_v10, %v732_v58 }
 0x210   : > { %v867_v14 = vpop.f32.mrf.mxu1 }
 0x211   : > { %v886_v16 = vpack.c.bf16 %v876_v12, %v873_v11  ;;  %v868_v17 = vadd.f32 %v867_v14, %v722_v63 }
 0x213   : > { %1198 = vtanh.bf16 %v886_v16  ;;  %v885_v19 = vpack.c.bf16 %v868_v17, %v865_v15 }
 0x215   : > { %1200 = vtanh.bf16 %v885_v19 }
 0x216   : > { %1202 = vtanh.bf16 %v884_v23 }
 0x217   : > { %1204 = vtanh.bf16 %v883_v28 }
 0x218   : > { %1206 = vtanh.bf16 %v882_v31 }
 0x219   : > { %1208 = vtanh.bf16 %v881_v38 }
 0x21a   : > { %1210 = vtanh.bf16 %v880_v42 }
 0x21b   : > { %1212 = vtanh.bf16 %v879_v47 }
 0x221   : > { %v1199_v34 = vpop.eup %1198 }
 0x222   : > { %1117 = vmatpush3.bf16.msra.mxu0 %v1199_v34 }
 0x223   : > { %1118 = vmatprep.subr.bf16.mxu0 %v1243_v52  ;;  %v1201_v39 = vpop.eup %1200 }
 0x224   : > { %v1203_v45 = vpop.eup %1202 }
 0x225   : > { %v1205_v48 = vpop.eup %1204 }
 0x226   : > { %1119 = vmatpush3.bf16.msra.mxu0 %v1201_v39  ;;  %v1207_v49 = vpop.eup %1206 }
 0x227   : > { %1120 = vmatprep.subr.bf16.mxu0 %v1243_v52  ;;  %v1209_v50 = vpop.eup %1208 }
 0x228   : > { %v1211_v51 = vpop.eup %1210 }
 0x229   : > { %v1213_v53 = vpop.eup %1212 }
 0x22a   : > { %1121 = vmatpush3.bf16.msra.mxu0 %v1203_v45 }
 0x22b   : > { %1122 = vmatprep.subr.bf16.mxu0 %v1243_v52 }
 0x22e   : > { %1123 = vmatpush3.bf16.msra.mxu0 %v1205_v48 }
 0x22f   : > { %1124 = vmatprep.subr.bf16.mxu0 %v1243_v52 }
 0x232   : > { %1125 = vmatpush3.bf16.msra.mxu0 %v1207_v49 }
 0x233   : > { %1126 = vmatprep.subr.bf16.mxu0 %v1243_v52 }
 0x236   : > { %1127 = vmatpush3.bf16.msra.mxu0 %v1209_v50 }
 0x237   : > { %1128 = vmatprep.subr.bf16.mxu0 %v1243_v52 }
 0x23a   : > { %1129 = vmatpush3.bf16.msra.mxu0 %v1211_v51 }
 0x23b   : > { %1130 = vmatprep.subr.bf16.mxu0 %v1243_v52 }
 0x23e   : > { %1131 = vmatpush3.bf16.msra.mxu0 %v1213_v53 }
 0x241   : > { %1133 = vmatmul.mubr.bf16.vlgmr.msra.gmra.mxu0 %v895_v54 }
 0x301   : > { %v932_v56 = vpop.f32.mrf.mxu0 }
 0x302   : > { %v933_v57 = vadd.f32 %v932_v56, %v897_v55 }
 0x303   : > { %v1134_v58 = vpop.f32.mrf.mxu0 }
 0x304   : > { %v938_v59 = vsub.f32 0.0, %v933_v57 }
 0x305   : > { %v935_v60 = vpop.f32.mrf.mxu0 }
 0x306   : > { %v939_v61 = vmul.f32 1.442695, %v938_v59 }
 0x307   : > { %v1135_v62 = vpop.f32.mrf.mxu0 }
 0x308   : > { %1214 = vpow2.f32 %v939_v61 }
 0x315   : > { %v1215_v52 = vpop.eup %1214 }
 0x316   : > { %v941_v63 = vadd.f32 1.0, %v1215_v52 }
 0x318   : > { %1216 = vrcp.f32 %v941_v63 }
 0x325   : > { %v1217_v0 = vpop.eup %1216 }
 0x326   : > { %943 = vst [vmem:[%s322_s26] sm:$0x1] %v1217_v0 }
 0x327 PF: > { %p15_p9 = scmp.ge.s32.totalorder %s1305_s29, 5   ;;  %s1520_s26 = smov %s1236_s27 }
 0x328   : > { %s1521_s27 = smov %s1314_s9  ;;  %s1522_s28 = smov %s1305_s29 }
 0x329   :  { %17 = sbr.rel (!%p15_p9) target bundleno = 4 (0x4), region = 124 }

</bundles_post_ra>
